<compile_context>
chip_gen: v5e
topology: v5e:2x2
jax: 0.10.0
libtpu: 0.0.40
codegen_flags: <defaults>
</compile_context>

<pallas_src>
import jax
import jax.numpy as jnp
from jax.experimental import pallas as pl
from jax.experimental.pallas import tpu as pltpu


def _round_up(x, m):
    return (x + m - 1) // m * m


# --------------------------- Pallas kernels ---------------------------------


def _conv_stats_kernel(patches_ref, w_ref, conv_ref, partials_ref):
    """Pass 1: conv tile via one MXU matmul + per-tile BN partial statistics."""
    conv = jnp.dot(patches_ref[...], w_ref[...],
                   preferred_element_type=jnp.float32)      # (TILE_M, OC_pad) f32
    conv_ref[...] = conv
    s = jnp.sum(conv, axis=0, keepdims=True)                # (1, OC_pad)
    ss = jnp.sum(conv * conv, axis=0, keepdims=True)        # (1, OC_pad)
    partials_ref[...] = jnp.concatenate([s, ss], axis=0)[None]   # (1, 2, OC_pad)


def _bn_relu_kernel(scale_shift_ref, conv_ref, o_ref):
    """Pass 2: folded BN affine (one FMA) + ReLU, lane-dense stores."""
    scale = scale_shift_ref[0:1, :]                          # (1, OC_pad)
    shift = scale_shift_ref[1:2, :]                          # (1, OC_pad)
    o_ref[...] = jnp.maximum(conv_ref[...] * scale + shift, 0.0)


# ------------------------------ wrapper --------------------------------------


def _im2col_nhwc(x_nhwc, kh=3, kw=3):
    """Valid conv (padding=0). Column order k = (i*kw + j)*C + c."""
    N, H, W, C = x_nhwc.shape
    OH, OW = H - kh + 1, W - kw + 1
    cols = []
    for i in range(kh):
        for j in range(kw):
            cols.append(x_nhwc[:, i:i + OH, j:j + OW, :])
    patches = jnp.concatenate(cols, axis=-1)                 # (N, OH, OW, kh*kw*C)
    return patches.reshape(N * OH * OW, kh * kw * C), (N, OH, OW)


def unit_forward(x_nchw, w_oihw, bias, gamma, beta, eps=1e-5, tile_m=512):
    """Forward pass of Unit. x_nchw: (N, Cin, H, W) -> (N, OC, OH, OW).

    `bias` is accepted for interface parity but is exactly cancelled by the
    training-mode BatchNorm mean subtraction, so it is not used.
    """
    del bias  # cancelled exactly by BN mean subtraction
    N, Cin, H, W = x_nchw.shape
    OC, _, kh, kw = w_oihw.shape

    x_nhwc = jnp.transpose(x_nchw, (0, 2, 3, 1))
    patches, (n, oh, ow) = _im2col_nhwc(x_nhwc, kh, kw)      # (M, K) f32
    M, K = patches.shape

    # Pad to lane-dense / MXU-dense shapes. Zero padding is exact:
    #  - extra K columns multiply zero weights,
    #  - extra M rows produce conv == 0 and contribute 0 to sum / sumsq,
    #  - extra OC columns are sliced away at the end.
    K_pad = _round_up(K, 128)
    OC_pad = _round_up(OC, 128)
    tile_m = min(tile_m, _round_up(M, 8))
    tile_m = _round_up(tile_m, 8)
    M_pad = _round_up(M, tile_m)
    num_tiles = M_pad // tile_m

    patches_p = jnp.pad(patches.astype(jnp.bfloat16),
                        ((0, M_pad - M), (0, K_pad - K)))
    # (OC, Cin, kh, kw) -> (kh, kw, Cin, OC) -> (K, OC), matching im2col order.
    w2d = jnp.transpose(w_oihw, (2, 3, 1, 0)).reshape(K, OC)
    w2d_p = jnp.pad(w2d.astype(jnp.bfloat16),
                    ((0, K_pad - K), (0, OC_pad - OC)))

    cparams = pltpu.CompilerParams(
        dimension_semantics=("parallel",),
        vmem_limit_bytes=32 * 1024 * 1024,
    )

    # ---- Pass 1: conv tiles + per-tile BN partial sums --------------------
    conv_hbm, partials = pl.pallas_call(
        _conv_stats_kernel,
        out_shape=(
            jax.ShapeDtypeStruct((M_pad, OC_pad), jnp.float32),
            jax.ShapeDtypeStruct((num_tiles, 2, OC_pad), jnp.float32),
        ),
        grid=(num_tiles,),
        in_specs=[
            pl.BlockSpec((tile_m, K_pad), lambda i: (i, 0)),
            pl.BlockSpec((K_pad, OC_pad), lambda i: (0, 0)),
        ],
        out_specs=(
            pl.BlockSpec((tile_m, OC_pad), lambda i: (i, 0)),
            pl.BlockSpec((1, 2, OC_pad), lambda i: (i, 0, 0)),
        ),
        compiler_params=cparams,
    )(patches_p, w2d_p)

    # ---- Tiny cross-tile combine + fold BN into per-channel scale/shift ---
    totals = jnp.sum(partials, axis=0)                        # (2, OC_pad)
    mean = totals[0] / M
    var = jnp.maximum(totals[1] / M - mean * mean, 0.0)       # biased variance
    gamma_p = jnp.pad(gamma.astype(jnp.float32), (0, OC_pad - OC),
                      constant_values=1.0)
    beta_p = jnp.pad(beta.astype(jnp.float32), (0, OC_pad - OC))
    scale = gamma_p * jax.lax.rsqrt(var + eps)
    shift = beta_p - mean * scale
    scale_shift = jnp.stack([scale, shift], axis=0)           # (2, OC_pad) f32

    # ---- Pass 2: normalize + ReLU ------------------------------------------
    out2d = pl.pallas_call(
        _bn_relu_kernel,
        out_shape=jax.ShapeDtypeStruct((M_pad, OC_pad), jnp.float32),
        grid=(num_tiles,),
        in_specs=[
            pl.BlockSpec((2, OC_pad), lambda i: (0, 0)),
            pl.BlockSpec((tile_m, OC_pad), lambda i: (i, 0)),
        ],
        out_specs=pl.BlockSpec((tile_m, OC_pad), lambda i: (i, 0)),
        compiler_params=cparams,
    )(scale_shift, conv_hbm)

    out = out2d[:M, :OC].reshape(n, oh, ow, OC)               # NHWC
    return jnp.transpose(out, (0, 3, 1, 2))                   # NCHW


# ------------------------------ reference ------------------------------------


def _reference(x_nchw, w_oihw, bias, gamma, beta, eps=1e-5):
    conv = jax.lax.conv_general_dilated(
        x_nchw, w_oihw, window_strides=(1, 1), padding="VALID",
        dimension_numbers=("NCHW", "OIHW", "NCHW"))
    conv = conv + bias[None, :, None, None]
    mean = jnp.mean(conv, axis=(0, 2, 3), keepdims=True)
    var = jnp.mean((conv - mean) ** 2, axis=(0, 2, 3), keepdims=True)
    xhat = (conv - mean) * jax.lax.rsqrt(var + eps)
    y = xhat * gamma[None, :, None, None] + beta[None, :, None, None]
    return jnp.maximum(y, 0.0)


if __name__ == "__main__":
    # Small shapes consistent with the module: Conv2d(inc=4, ouc=8, k=3, pad=0).
    N, Cin, H, W = 2, 4, 16, 16
    OC = 8

    key = jax.random.PRNGKey(0)
    kx, kw, kb, kg, kbe = jax.random.split(key, 5)
    x = jax.random.normal(kx, (N, Cin, H, W), dtype=jnp.float32)
    # Deterministic synthetic parameter init (not a checkpoint load).
    w = jax.random.normal(kw, (OC, Cin, 3, 3), dtype=jnp.float32) * 0.1
    b = jax.random.normal(kb, (OC,), dtype=jnp.float32) * 0.1
    gamma = 1.0 + 0.1 * jax.random.normal(kg, (OC,), dtype=jnp.float32)
    beta = 0.1 * jax.random.normal(kbe, (OC,), dtype=jnp.float32)

    # Small tile on purpose: M = 2*14*14 = 392 -> 4 grid steps with tile_m=128,
    # exercising the multi-tile grid and the padded-row statistics path.
    out = unit_forward(x, w, b, gamma, beta, tile_m=128)
    out = jax.block_until_ready(out)
    assert out.shape == (N, OC, H - 2, W - 2), out.shape

    # Tight check: reference with the same bf16-rounded matmul operands
    # (isolates kernel logic from the expected bf16 input quantization).
    x_r = x.astype(jnp.bfloat16).astype(jnp.float32)
    w_r = w.astype(jnp.bfloat16).astype(jnp.float32)
    ref_bf16 = _reference(x_r, w_r, b, gamma, beta)
    assert jnp.allclose(out, ref_bf16, atol=5e-3, rtol=5e-3), float(
        jnp.max(jnp.abs(out - ref_bf16)))

    # Loose check against the pure-f32 reference (bf16 MXU operand rounding).
    ref = _reference(x, w, b, gamma, beta)
    assert jnp.allclose(out, ref, atol=5e-2, rtol=5e-2), float(
        jnp.max(jnp.abs(out - ref)))

    print("KERNEL_OK")
</pallas_src>

<mosaic_0001>
module attributes {stable_mosaic.version = 11 : i64} {
  func.func @_conv_stats_kernel(%arg0: i32, %arg1: memref<128x128xbf16, #tpu.memory_space<vmem>>, %arg2: memref<128x128xbf16, #tpu.memory_space<vmem>>, %arg3: memref<128x128xf32, #tpu.memory_space<vmem>>, %arg4: memref<1x2x128xf32, #tpu.memory_space<vmem>>) attributes {dimension_semantics = [#tpu.dimension_semantics<parallel>], iteration_bounds = array<i64: 4>, scalar_prefetch = 0 : i64, scratch_operands = 0 : i64, tpu.core_type = #tpu.core_type<tc>, window_params = [{transform_indices = @transform_0, window_bounds = array<i64: 128, 128>}, {pipeline_mode = #tpu.pipeline_mode<synchronous>, transform_indices = @transform_1, window_bounds = array<i64: 128, 128>}, {transform_indices = @transform_2, window_bounds = array<i64: 128, 128>}, {transform_indices = @transform_3, window_bounds = array<i64: 1, 2, 128>}]} {
    %c0 = arith.constant 0 : index
    %c0_0 = arith.constant 0 : index
    %0 = vector.load %arg1[%c0, %c0_0] : memref<128x128xbf16, #tpu.memory_space<vmem>>, vector<128x128xbf16>
    %c0_1 = arith.constant 0 : index
    %c0_2 = arith.constant 0 : index
    %1 = vector.load %arg2[%c0_1, %c0_2] : memref<128x128xbf16, #tpu.memory_space<vmem>>, vector<128x128xbf16>
    %cst = arith.constant dense<0.000000e+00> : vector<128x128xf32>
    %2 = tpu.matmul %0, %1, %cst {dimension_numbers = #tpu.dot_dimension_numbers<[1], [0], [0], [1], [0, 0, 1, 1], [], []>} : vector<128x128xbf16>, vector<128x128xbf16>, vector<128x128xf32> -> vector<128x128xf32>
    %c0_3 = arith.constant 0 : index
    %c0_4 = arith.constant 0 : index
    %3 = vector.load %arg3[%c0_3, %c0_4] : memref<128x128xf32, #tpu.memory_space<vmem>>, vector<128x128xf32>
    tpu.vector_store %arg3[%c0_3, %c0_4], %2 {strides = array<i32>} : memref<128x128xf32, #tpu.memory_space<vmem>>, vector<128x128xf32>,
    %cst_5 = arith.constant dense<0.000000e+00> : vector<128xf32>
    %4 = vector.multi_reduction <add>, %2, %cst_5 [0] : vector<128x128xf32> to vector<128xf32>
    %5 = vector.shape_cast %4 : vector<128xf32> to vector<1x128xf32>
    %6 = arith.mulf %2, %2 : vector<128x128xf32>
    %cst_6 = arith.constant dense<0.000000e+00> : vector<128xf32>
    %7 = vector.multi_reduction <add>, %6, %cst_6 [0] : vector<128x128xf32> to vector<128xf32>
    %8 = vector.shape_cast %7 : vector<128xf32> to vector<1x128xf32>
    %9 = tpu.concatenate %5, %8 in 0 : vector<1x128xf32>, vector<1x128xf32> -> vector<2x128xf32>
    %10 = vector.shape_cast %9 : vector<2x128xf32> to vector<1x2x128xf32>
    %c0_7 = arith.constant 0 : index
    %c0_8 = arith.constant 0 : index
    %c0_9 = arith.constant 0 : index
    %11 = vector.load %arg4[%c0_7, %c0_8, %c0_9] : memref<1x2x128xf32, #tpu.memory_space<vmem>>, vector<1x2x128xf32>
    tpu.vector_store %arg4[%c0_7, %c0_8, %c0_9], %10 {strides = array<i32>} : memref<1x2x128xf32, #tpu.memory_space<vmem>>, vector<1x2x128xf32>,
    return
  }
  func.func @transform_0(%arg0: i32) -> (i32, i32) {
    %c0_i32 = arith.constant 0 : i32
    %c0_i32_0 = arith.constant 0 : i32
    return %arg0, %c0_i32 : i32, i32
  }
  func.func @transform_1(%arg0: i32) -> (i32, i32) {
    %c0_i32 = arith.constant 0 : i32
    %c0_i32_0 = arith.constant 0 : i32
    %c0_i32_1 = arith.constant 0 : i32
    return %c0_i32, %c0_i32_0 : i32, i32
  }
  func.func @transform_2(%arg0: i32) -> (i32, i32) {
    %c0_i32 = arith.constant 0 : i32
    %c0_i32_0 = arith.constant 0 : i32
    return %arg0, %c0_i32 : i32, i32
  }
  func.func @transform_3(%arg0: i32) -> (i32, i32, i32) {
    %c0_i32 = arith.constant 0 : i32
    %c0_i32_0 = arith.constant 0 : i32
    %c0_i32_1 = arith.constant 0 : i32
    return %arg0, %c0_i32, %c0_i32_0 : i32, i32, i32
  }
}

</mosaic_0001>

<bundles_post_ra>
// kernel: tpu_custom_call.1
= control target key start
LH: loop header
LB: loop body
LE: loop exit
PB: predicated region body
PF: predicated region fallthrough
CT: control target
= control target key end

     0   :  { %9 = vsyncpa [#allocation3], 0  ;;  %s1231_s0 = inlined_call_operand.hbm [shape: bf16[512,128], index: 0, kind: input, shape index: {}]   ;;  %s1232_s1 = inlined_call_operand.hbm [shape: bf16[128,128], index: 1, kind: input, shape index: {}]   ;;  %s1233_s2 = inlined_call_operand.hbm [shape: f32[512,128], index: 2, kind: output, shape index: {0}]   ;;  %s1234_s3 = inlined_call_operand.hbm [shape: f32[4,2,128], index: 3, kind: output, shape index: {1}]  }
   0x1   :  { %11 = vsyncpa [#allocation3 + $0x1], 0 }
   0x2   :  { %12 = vsyncpa [#allocation6], 0 }
   0x3   :  { %13 = vsyncpa [#allocation4], 0 }
   0x4   :  { %15 = vsyncpa [#allocation4 + $0x1], 0 }
   0x5   :  { %16 = vsyncpa [#allocation9], 0 }
   0x6   :  { %18 = vsyncpa [#allocation9 + $0x1], 0  ;;  %s1006_s12 = smov 0   ;;  %s1008_s13 = smov 0  }
   0x7   :  { %s1010_s14 = smov 0   ;;  %s1012_s15 = smov 0  }
   0x8 LB: > { %s1027_s16 = sadd.s32 4294967295, %s979_s15   ;;  %s626_s17 = sadd.s32 4294967294, %s979_s15   ;;  %s979_s15 = sphi %s1012_s15, %s1243_s15   ;;  %s975_s14 = sphi %s1010_s14, %s1242_s14   ;;  %s971_s13 = sphi %s1008_s13, %s1241_s13   ;;  %s967_s12 = sphi %s1006_s12, %s1240_s12  }
   0x9   : > { %p44_p0 = scmp.ne.s32.totalorder %s971_s13, %s967_s12  ;;  %p45_p1 = scmp.eq.s32.totalorder %s1027_s16, 0 }
   0xa   : > { %p89_p2 = scmp.eq.s32.totalorder %s1027_s16, 3  ;;  %p95_p3 = scmp.eq.s32.totalorder %s626_s17, 3 }
   0xb   : > { %p1036_p4 = por %p45_p1, %p44_p0  ;;  %p627_p5 = scmp.ge.s32.totalorder %s979_s15, 1 }
   0xc   : > { %p1041_p6 = por %p95_p3, %p44_p0  ;;  %p128_p7 = scmp.lt.s32.totalorder %s979_s15, 5 }
   0xd   : > { %s139_s22 = sshll.u32 %s1232_s1, 4  ;;  %s981_s24 = smov [#allocation5]   ;;  %s140_s22 = int_to_ptr.hbm [resolvable:$true] %s139_s22 }
   0xe   : > { %p1049_p8 = pnand %p627_p5, %p128_p7  ;;  %s141_s25 = sshll.u32 %s981_s24, 4  ;;  %s142_s25 = int_to_ptr.vmem [resolvable:$true] %s141_s25 }
   0xf   : > { %s1058_s26 = sadd.s32 1, %s979_s15   ;;  %s982_s27 = smov 64  }
  0x10   : > { %p761_p9 = pneg %p1049_p8  ;;  %s983_s28 = smov 4  }
  0x11   : > { %s28_s29 = ssub.s32 %s979_s15, %s1058_s26  ;;  %s31_s30 = sadd.s32 1, %s975_s14 }
  0x12   : > { %p762_p10 = pnand %p761_p9, %p45_p1  ;;  %p29_p11 = scmp.eq.s32.totalorder %s28_s29, 0 }
  0x13   : > { %p38_p12 = scmp.ne.s32.totalorder %s975_s14, %s971_s13  ;;  %p39_p13 = scmp.eq.s32.totalorder %s979_s15, 0 }
  0x14   : > { %764 = dma.hbm_to_vmem [thread:$0]  (!%p762_p10), %s140_s22, 1024, %s142_s25, [#allocation6], %s982_s27, %s982_s27, %s983_s28  }
  0x15   : > { %s1070_s4 = scalar_select %p29_p11, %s975_s14, %s31_s30  }
  0x16   : > { %p1074_p0 = por %p89_p2, %p38_p12  ;;  %p777_p3 = scmp.lt.s32.totalorder %s979_s15, 4 }
  0x17   : > { %s155_s6 = sand.u32 1, %s975_s14   ;;  %s709_s7 = sshll.u32 %s979_s15, 6 }
  0x18   : > { %p40_p5 = por %p39_p13, %p38_p12  ;;  %s630_s8 = sshll.u32 %s155_s6, 6 }
  0x19   : > { %s164_s11 = scalar_lea.hbm %s1231_s0, %s709_s7  ;;  %s159_s20 = scalar_lea.vmem [#allocation2], %s630_s8 }
  0x1a   : > { %s165_s17 = sshll.u32 %s164_s11, 4  ;;  %s167_s21 = sshll.u32 %s159_s20, 4  ;;  %s166_s17 = int_to_ptr.hbm [resolvable:$true] %s165_s17  ;;  %s168_s21 = int_to_ptr.vmem [resolvable:$true] %s167_s21 }
  0x1b   : > { %p1084_p7 = pnand %p777_p3, %p40_p5  ;;  %s156_s24 = scalar_lea.sflag [#allocation3], %s155_s6 }
  0x1c   : > { %s847_s25 = sshra.s32 %s166_s17, 4  ;;  %s854_s8 = scalar_lea.hbm %s1231_s0, 256  ;;  %s848_s25 = int_to_ptr.hbm [resolvable:$true] %s847_s25 }
  0x1d   : > { %s849_s29 = scalar_lea.hbm %s848_s25, 64  ;;  %p851_p9 = pneg %p1084_p7 }
  0x1e   : > { %p850_p2 = scmp.ne.s32.totalorder %s848_s25, %s849_s29  ;;  %p855_p12 = scmp.lt.s32.totalorder %s848_s25, %s1231_s0 }
  0x1f   : > { %p856_p13 = scmp.lt.s32.totalorder %s854_s8, %s849_s29 }
  0x20   : > { %p852_p10 = pnand %p851_p9, %p850_p2 }
  0x21   : > { %p857_p3 = por %p856_p13, %p855_p12 }
  0x22   : > { %p853_p11 = pneg %p852_p10 }
  0x24   : > { %p858_p5 = pnand %p857_p3, %p853_p11 }
  0x26   : > { %861 = shalt.err (!%p858_p5)
}
  0x27   : > { %768 = dma.hbm_to_vmem [thread:$0]  (!%p1084_p7), %s166_s17, 1024, %s168_s21, %s156_s24, %s982_s27, %s982_s27, %s983_s28  }
  0x28   : > { %179 = sbr.rel (%p1049_p8) target bundleno = 274 (0x112), region = 28  ;;  %s1104_s6 = sand.u32 (!%p1049_p8), 1, %s971_s13  }
  0x29   : > { %s634_s11 = sshll.u32 (!%p1049_p8), %s1104_s6, 6  ;;  %s182_s20 = scalar_lea.sflag (!%p1049_p8), [#allocation3], %s1104_s6 }
  0x2a   : > { %s1108_s25 = scalar_lea.vmem (!%p1049_p8), [#allocation2], %s634_s11 }
  0x2d   : > { %950 = dma.done.wait (%p1036_p4), %s182_s20, 1024  }
  0x2e   : > { %952 = vsyncadd (%p1036_p4), %s182_s20, 4294966272 }
  0x2f   : > { %954 = dma.done.wait (%p45_p1), [#allocation6], 1024  }
  0x30   : > { %956 = vsyncadd (%p45_p1), [#allocation6], 4294966272  ;;  %v725_v0 = vld [vmem:[#allocation5 + $0x38] sm:$0xff]  ;;  %v724_v1 = vld [vmem:[#allocation5 + $0x30] sm:$0xff]  ;;  %s636_s18 = sshll.u32 %s1104_s6, 7  ;;  %s726_s27 = sshll.u32 %s1027_s16, 7 }
  0x31   : > { %349 = vmatpush.bf16.msra.mxu0 %v725_v0  ;;  %727 = vmatpush.bf16.msra.mxu1 %v725_v0  ;;  %v723_v2 = vld [vmem:[#allocation5 + $0x28] sm:$0xff]  ;;  %v722_v3 = vld [vmem:[#allocation5 + $0x20] sm:$0xff]  ;;  %v721_v4 = vld [vmem:[#allocation5 + $0x18] sm:$0xff]  ;;  %s1127_s23 = scalar_lea.vmem [#allocation7], %s636_s18  ;;  %s492_s21 = scalar_lea.hbm %s1233_s2, %s726_s27 }
  0x32   : > { %728 = vmatpush.bf16.msra.mxu2 %v725_v0  ;;  %729 = vmatpush.bf16.msra.mxu3 %v725_v0  ;;  %v720_v5 = vld [vmem:[#allocation5 + $0x10] sm:$0xff]  ;;  %v719_v6 = vld [vmem:[#allocation5 + $0x8] sm:$0xff]  ;;  %v718_v7 = vld [vmem:[#allocation5] sm:$0xff]  ;;  %s493_s22 = sshll.u32 %s1127_s23, 4  ;;  %s495_s24 = sshll.u32 %s492_s21, 4  ;;  %s1163_s22 = int_to_ptr.vmem [resolvable:$true] %s493_s22  ;;  %s1165_s24 = int_to_ptr.hbm [resolvable:$true] %s495_s24 }
  0x33   : > { %v710_v8 = vld [vmem:[%s1108_s25] sm:$0xff]  ;;  %v712_v9 = vld [vmem:[%s1108_s25 + $0x10] sm:$0xff]  ;;  %v711_v12 = vld [vmem:[%s1108_s25 + $0x8] sm:$0xff]  ;;  %s476_s29 = scalar_lea.sflag [#allocation4], %s1104_s6  ;;  %s891_s30 = sshra.s32 %s1165_s24, 4  ;;  %s892_s30 = int_to_ptr.hbm [resolvable:$true] %s891_s30 }
  0x34   : > { %v714_v10 = vld [vmem:[%s1108_s25 + $0x20] sm:$0xff]  ;;  %v716_v11 = vld [vmem:[%s1108_s25 + $0x30] sm:$0xff]  ;;  %v713_v13 = vld [vmem:[%s1108_s25 + $0x18] sm:$0xff]  ;;  %s893_s7 = scalar_lea.hbm %s892_s30, 128  ;;  %s897_s10 = scalar_lea.hbm %s1233_s2, 512 }
  0x35   : > { %350 = vmatpush.bf16.msra.mxu0 %v724_v1  ;;  %730 = vmatpush.bf16.msra.mxu1 %v724_v1  ;;  %v715_v14 = vld [vmem:[%s1108_s25 + $0x28] sm:$0xff]  ;;  %v717_v15 = vld [vmem:[%s1108_s25 + $0x38] sm:$0xff]  ;;  %p894_p1 = scmp.ne.s32.totalorder %s892_s30, %s893_s7  ;;  %p898_p7 = scmp.lt.s32.totalorder %s892_s30, %s1233_s2 }
  0x36   : > { %731 = vmatpush.bf16.msra.mxu2 %v724_v1  ;;  %732 = vmatpush.bf16.msra.mxu3 %v724_v1  ;;  %p899_p2 = scmp.lt.s32.totalorder %s897_s10, %s893_s7 }
  0x37   : > { %p895_p4 = pnand %p894_p1, %p1074_p0 }
  0x38   : > { %p900_p9 = por %p899_p2, %p898_p7 }
  0x39   : > { %351 = vmatpush.bf16.msra.mxu0 %v723_v2  ;;  %733 = vmatpush.bf16.msra.mxu1 %v723_v2  ;;  %p896_p8 = pneg %p895_p4 }
  0x3a   : > { %734 = vmatpush.bf16.msra.mxu2 %v723_v2  ;;  %735 = vmatpush.bf16.msra.mxu3 %v723_v2 }
  0x3b   : > { %p901_p10 = pnand %p900_p9, %p896_p8 }
  0x3d   : > { %352 = vmatpush.bf16.msra.mxu0 %v722_v3  ;;  %736 = vmatpush.bf16.msra.mxu1 %v722_v3 }
  0x3e   : > { %737 = vmatpush.bf16.msra.mxu2 %v722_v3  ;;  %738 = vmatpush.bf16.msra.mxu3 %v722_v3 }
  0x41   : > { %353 = vmatpush.bf16.msra.mxu0 %v721_v4  ;;  %739 = vmatpush.bf16.msra.mxu1 %v721_v4 }
  0x42   : > { %740 = vmatpush.bf16.msra.mxu2 %v721_v4  ;;  %741 = vmatpush.bf16.msra.mxu3 %v721_v4 }
  0x45   : > { %354 = vmatpush.bf16.msra.mxu0 %v720_v5  ;;  %742 = vmatpush.bf16.msra.mxu1 %v720_v5 }
  0x46   : > { %743 = vmatpush.bf16.msra.mxu2 %v720_v5  ;;  %744 = vmatpush.bf16.msra.mxu3 %v720_v5 }
  0x49   : > { %355 = vmatpush.bf16.msra.mxu0 %v719_v6  ;;  %745 = vmatpush.bf16.msra.mxu1 %v719_v6 }
  0x4a   : > { %746 = vmatpush.bf16.msra.mxu2 %v719_v6  ;;  %747 = vmatpush.bf16.msra.mxu3 %v719_v6 }
  0x4d   : > { %356 = vmatpush.bf16.msra.mxu0 %v718_v7  ;;  %748 = vmatpush.bf16.msra.mxu1 %v718_v7 }
  0x4e   : > { %749 = vmatpush.bf16.msra.mxu2 %v718_v7  ;;  %750 = vmatpush.bf16.msra.mxu3 %v718_v7 }
  0x50   : > { %357 = vmatmul.bf16.vlgmr.msra.gmra.mxu0 %v710_v8  ;;  %367 = vmatmul.bf16.vlgmr.msra.gmra.mxu1 %v712_v9 }
  0x51   : > { %377 = vmatmul.bf16.vlgmr.msra.gmra.mxu2 %v714_v10  ;;  %387 = vmatmul.bf16.vlgmr.msra.gmra.mxu3 %v716_v11 }
  0x60   : > { %362 = vmatmul.bf16.gmra.mxu0 %v711_v12  ;;  %372 = vmatmul.bf16.gmra.mxu1 %v713_v13 }
  0x61   : > { %382 = vmatmul.bf16.gmra.mxu2 %v715_v14  ;;  %392 = vmatmul.bf16.gmra.mxu3 %v717_v15 }
  0xcd   : > { %v358_v16 = vpop.f32.mrf.mxu0  ;;  %v368_v17 = vpop.f32.mrf.mxu1 }
  0xce   : > { %398 = vst [vmem:[%s1127_s23] sm:$0xff] %v358_v16  ;;  %v435_v27 = vmul.f32 %v358_v16, %v358_v16  ;;  %v439_v39 = vmul.f32 %v368_v17, %v368_v17 }
  0xcf   : > { %402 = vst [vmem:[%s1127_s23 + $0x20] sm:$0xff] %v368_v17 }
  0xd4   : > { %v1131_v18 = vpop.f32.mrf.mxu2  ;;  %v1133_v19 = vpop.f32.mrf.mxu3 }
  0xd5   : > { %v360_v20 = vpop.f32.mrf.mxu0  ;;  %v370_v21 = vpop.f32.mrf.mxu1  ;;  %406 = vst [vmem:[%s1127_s23 + $0x40] sm:$0xff] %v1131_v18 }
  0xd6   : > { %399 = vst [vmem:[%s1127_s23 + $0x8] sm:$0xff] %v360_v20  ;;  %v436_v26 = vmul.f32 %v360_v20, %v360_v20  ;;  %v414_v28 = vadd.f32 %v360_v20, %v358_v16  ;;  %v440_v42 = vmul.f32 %v370_v21, %v370_v21 }
  0xd7   : > { %403 = vst [vmem:[%s1127_s23 + $0x28] sm:$0xff] %v370_v21 }
  0xd8   : > { %410 = vst [vmem:[%s1127_s23 + $0x60] sm:$0xff] %v1133_v19  ;;  %v451_v30 = vadd.f32 %v436_v26, %v435_v27 }
  0xdc   : > { %v1141_v22 = vpop.f32.mrf.mxu2  ;;  %v1143_v23 = vpop.f32.mrf.mxu3 }
  0xdd   : > { %v363_v24 = vpop.f32.mrf.mxu0  ;;  %v373_v25 = vpop.f32.mrf.mxu1  ;;  %407 = vst [vmem:[%s1127_s23 + $0x48] sm:$0xff] %v1141_v22 }
  0xde   : > { %400 = vst [vmem:[%s1127_s23 + $0x10] sm:$0xff] %v363_v24  ;;  %v437_v29 = vmul.f32 %v363_v24, %v363_v24  ;;  %v415_v31 = vadd.f32 %v414_v28, %v363_v24  ;;  %v441_v45 = vmul.f32 %v373_v25, %v373_v25 }
  0xdf   : > { %404 = vst [vmem:[%s1127_s23 + $0x30] sm:$0xff] %v373_v25 }
  0xe0   : > { %411 = vst [vmem:[%s1127_s23 + $0x68] sm:$0xff] %v1143_v23  ;;  %v452_v36 = vadd.f32 %v451_v30, %v437_v29 }
  0xe4   : > { %v383_v32 = vpop.f32.mrf.mxu2  ;;  %v1152_v33 = vpop.f32.mrf.mxu3 }
  0xe5   : > { %v365_v34 = vpop.f32.mrf.mxu0  ;;  %v375_v35 = vpop.f32.mrf.mxu1  ;;  %408 = vst [vmem:[%s1127_s23 + $0x50] sm:$0xff] %v383_v32 }
  0xe6   : > { %401 = vst [vmem:[%s1127_s23 + $0x18] sm:$0xff] %v365_v34  ;;  %v416_v37 = vadd.f32 %v415_v31, %v365_v34  ;;  %v438_v38 = vmul.f32 %v365_v34, %v365_v34  ;;  %v442_v51 = vmul.f32 %v375_v35, %v375_v35 }
  0xe7   : > { %405 = vst [vmem:[%s1127_s23 + $0x38] sm:$0xff] %v375_v35 }
  0xe8   : > { %v417_v40 = vadd.f32 %v416_v37, %v368_v17  ;;  %v453_v41 = vadd.f32 %v452_v36, %v438_v38  ;;  %412 = vst [vmem:[%s1127_s23 + $0x70] sm:$0xff] %v1152_v33 }
  0xea   : > { %v454_v43 = vadd.f32 %v453_v41, %v439_v39  ;;  %v418_v44 = vadd.f32 %v417_v40, %v370_v21 }
  0xec   : > { %v419_v46 = vadd.f32 %v418_v44, %v373_v25  ;;  %v455_v47 = vadd.f32 %v454_v43, %v440_v42  ;;  %v385_v48 = vpop.f32.mrf.mxu2  ;;  %v395_v49 = vpop.f32.mrf.mxu3 }
  0xed   : > { %409 = vst [vmem:[%s1127_s23 + $0x58] sm:$0xff] %v385_v48 }
  0xee   : > { %v420_v50 = vadd.f32 %v419_v46, %v375_v35  ;;  %v456_v52 = vadd.f32 %v455_v47, %v441_v45  ;;  %413 = vst [vmem:[%s1127_s23 + $0x78] sm:$0xff] %v395_v49 }
  0xef   : > { %904 = shalt.err (!%p901_p10)
}
  0xf0   : > { %s984_s25 = smov 128   ;;  %s985_s18 = smov 8   ;;  %v443_v53 = vmul.f32 %v1131_v18, %v1131_v18  ;;  %v421_v54 = vadd.f32 %v420_v50, %v1131_v18  ;;  %v457_v55 = vadd.f32 %v456_v52, %v442_v51  ;;  %v444_v56 = vmul.f32 %v1141_v22, %v1141_v22 }
  0xf1   : > { %757 = dma.vmem_to_hbm [thread:$0]  (%p1074_p0), %s1163_s22, 2048, %s1165_s24, %s476_s29, %s984_s25, %s984_s25, %s985_s18   ;;  %v445_v60 = vmul.f32 %v383_v32, %v383_v32  ;;  %v446_v0 = vmul.f32 %v385_v48, %v385_v48  ;;  %v447_v1 = vmul.f32 %v1133_v19, %v1133_v19  ;;  %v448_v4 = vmul.f32 %v1143_v23, %v1143_v23 }
  0xf2   : > { %v458_v57 = vadd.f32 %v457_v55, %v443_v53  ;;  %v422_v58 = vadd.f32 %v421_v54, %v1141_v22  ;;  %v449_v8 = vmul.f32 %v1152_v33, %v1152_v33  ;;  %v450_v12 = vmul.f32 %v395_v49, %v395_v49  ;;  %s637_s23 = sshll.u32 %s1104_s6, 1  ;;  %s706_s27 = sshll.u32 %s1027_s16, 1 }
  0xf3   : > { %s508_s21 = scalar_lea.hbm %s1234_s3, %s706_s27  ;;  %s218_s22 = scalar_lea.vmem [#allocation8], %s637_s23  ;;  %vm472_vm0 = vcmask 1040384  }
  0xf4   : > { %v423_v59 = vadd.f32 %v422_v58, %v383_v32  ;;  %v459_v61 = vadd.f32 %v458_v57, %v444_v56  ;;  %s510_s24 = sshll.u32 %s218_s22, 4  ;;  %s512_s29 = sshll.u32 %s508_s21, 4  ;;  %s511_s24 = int_to_ptr.vmem [resolvable:$true] %s510_s24  ;;  %s513_s29 = int_to_ptr.hbm [resolvable:$true] %s512_s29 }
  0xf5   : > { %s481_s16 = scalar_lea.sflag [#allocation9], %s1104_s6  ;;  %s919_s30 = sshra.s32 %s513_s29, 4  ;;  %s920_s30 = int_to_ptr.hbm [resolvable:$true] %s919_s30 }
  0xf6   : > { %v460_v62 = vadd.f32 %v459_v61, %v445_v60  ;;  %v424_v63 = vadd.f32 %v423_v59, %v385_v48  ;;  %s921_s7 = scalar_lea.hbm %s920_s30, 2  ;;  %s925_s10 = scalar_lea.hbm %s1234_s3, 8 }
  0xf7   : > { %p922_p11 = scmp.ne.s32.totalorder %s920_s30, %s921_s7  ;;  %p926_p3 = scmp.lt.s32.totalorder %s920_s30, %s1234_s3 }
  0xf8   : > { %v425_v2 = vadd.f32 %v424_v63, %v1133_v19  ;;  %v461_v3 = vadd.f32 %v460_v62, %v446_v0  ;;  %p927_p5 = scmp.lt.s32.totalorder %s925_s10, %s921_s7 }
  0xf9   : > { %p923_p12 = pnand %p922_p11, %p1074_p0 }
  0xfa   : > { %v462_v5 = vadd.f32 %v461_v3, %v447_v1  ;;  %v426_v6 = vadd.f32 %v425_v2, %v1143_v23  ;;  %p928_p1 = por %p927_p5, %p926_p3 }
  0xfb   : > { %p924_p13 = pneg %p923_p12 }
  0xfc   : > { %v427_v7 = vadd.f32 %v426_v6, %v1152_v33  ;;  %v463_v9 = vadd.f32 %v462_v5, %v448_v4 }
  0xfd   : > { %p929_p4 = pnand %p928_p1, %p924_p13 }
  0xfe   : > { %v464_v10 = vadd.f32 %v463_v9, %v449_v8  ;;  %v428_v11 = vadd.f32 %v427_v7, %v395_v49 }
 0x100   : > { %v429_v13 = vrot.slane %v428_v11, 4  ;;  %v465_v14 = vadd.f32 %v464_v10, %v450_v12 }
 0x102   : > { %v430_v15 = vadd.f32 %v429_v13, %v428_v11  ;;  %v466_v16 = vrot.slane %v465_v14, 4 }
 0x104   : > { %v431_v17 = vrot.slane %v430_v15, 2  ;;  %v467_v18 = vadd.f32 %v466_v16, %v465_v14 }
 0x106   : > { %v432_v19 = vadd.f32 %v431_v17, %v430_v15  ;;  %v468_v20 = vrot.slane %v467_v18, 2 }
 0x108   : > { %v433_v21 = vrot.slane %v432_v19, 1  ;;  %v469_v22 = vadd.f32 %v468_v20, %v467_v18 }
 0x10a   : > { %v470_v23 = vrot.slane %v469_v22, 1  ;;  %v434_v24 = vadd.f32 %v433_v21, %v432_v19 }
 0x10c   : > { %v471_v25 = vadd.f32 %v470_v23, %v469_v22 }
 0x10e   : > { %v473_v26 = vsel %vm472_vm0, %v434_v24, %v471_v25 }
 0x10f   : > { %474 = vst [vmem:[%s218_s22] sm:$0x3] %v473_v26 }
 0x110   : > { %932 = shalt.err (!%p929_p4)
}
 0x111   : > { %758 = dma.vmem_to_hbm [thread:$0]  (%p1074_p0), %s511_s24, 32, %s513_s29, %s481_s16  }
 0x112 PF: > { %p779_p8 = scmp.ge.s32.totalorder %s979_s15, 2  ;;  %s524_s6 = sand.u32 1, %s967_s12  }
 0x113   : > { %s525_s25 = scalar_lea.sflag [#allocation4], %s524_s6 }
 0x114   : > { %p770_p7 = pnand %p779_p8, %p1041_p6 }
 0x116   : > { %p771_p2 = pneg %p770_p7 }
 0x118   : > { %958 = dma.done.wait (%p771_p2), %s525_s25, 2048  }
 0x119   : > { %960 = vsyncadd (%p771_p2), %s525_s25, 4294965248  ;;  %s535_s18 = scalar_lea.sflag [#allocation9], %s524_s6 }
 0x11a   : > { %962 = dma.done.wait (%p771_p2), %s535_s18, 32  }
 0x11b   : > { %964 = vsyncadd (%p771_p2), %s535_s18, 4294967264  ;;  %p21_p0 = scmp.ge.s32.totalorder %s1058_s26, 6   ;;  %s1240_s12 = smov %s971_s13 }
 0x11c   : > { %s1241_s13 = smov %s975_s14  ;;  %s1242_s14 = smov %s1070_s4 }
 0x11d   : > { %s1243_s15 = smov %s1058_s26  ;;  %23 = sbr.rel (!%p21_p0) target bundleno = 8 (0x8), region = 94 }
 0x122   :  { %541 = vsyncpa [#allocation3], 1 }
 0x123   :  { %543 = vsyncpa [#allocation3 + $0x1], 1 }
 0x124   :  { %544 = vsyncpa [#allocation6], 1 }
 0x125   :  { %545 = vsyncpa [#allocation4], 1 }
 0x126   :  { %547 = vsyncpa [#allocation4 + $0x1], 1 }
 0x127   :  { %548 = vsyncpa [#allocation9], 1 }
 0x128   :  { %550 = vsyncpa [#allocation9 + $0x1], 1 }

</bundles_post_ra>
